<compile_context>
chip_gen: v7x
topology: tpu7x:2x2x1
jax: 0.10.0
libtpu: 0.0.40
codegen_flags: <defaults>
</compile_context>

<pallas_src>
import jax
import jax.numpy as jnp
from jax.experimental import pallas as pl
from jax.experimental.pallas import tpu as pltpu


# ---------------------------------------------------------------------------
# Scoring kernel: one (tm, tn) score tile per grid step, full (unpadded) D as
# the contraction dim.  Item table arrives already transposed to (D, I) so the
# MXU is fed directly with no in-kernel relayout.
# ---------------------------------------------------------------------------
def _scores_kernel(u_ref, itT_ref, scores_ref):
    scores_ref[...] = jnp.dot(
        u_ref[...], itT_ref[...], preferred_element_type=jnp.float32
    ).astype(scores_ref.dtype)


# ---------------------------------------------------------------------------
# Regularization kernel: 1-D grid over row blocks of one embedding table in
# its original (rows, D) layout.  Per-lane partial sums are accumulated in a
# (2, D) f32 VMEM scratch; the cross-lane reduce + SMEM scalar write happens
# once, at the last grid step.
# NOTE: the grid axis must remain "arbitrary" -- the accumulation is a
# sequential read-modify-write and would race under "parallel".
# ---------------------------------------------------------------------------
def _make_reg_kernel(total_rows, rows_per_block):
    def kernel(e_ref, reg_ref, acc_ref):
        i = pl.program_id(0)

        @pl.when(i == 0)
        def _():
            acc_ref[...] = jnp.zeros_like(acc_ref)

        x = e_ref[...].astype(jnp.float32)
        # Mask rows past the end of the table (edge blocks contain garbage).
        row = i * rows_per_block + jax.lax.broadcasted_iota(
            jnp.int32, x.shape, 0)
        x = jnp.where(row < total_rows, x, 0.0)

        acc_ref[0:1, :] += jnp.sum(x * x, axis=0, keepdims=True)
        acc_ref[1:2, :] += jnp.sum(jnp.abs(x), axis=0, keepdims=True)

        @pl.when(i == pl.num_programs(0) - 1)
        def _():
            reg_ref[0, 0] = jnp.sum(acc_ref[0:1, :])
            reg_ref[0, 1] = jnp.sum(acc_ref[1:2, :])

    return kernel


def _emb_reg(emb_2d, *, rows_per_block=1024):
    """Returns a (1, 2) f32 array [sum(x^2), sum(|x|)] for a (rows, D) table."""
    R, D = emb_2d.shape
    rb = R if R <= rows_per_block else rows_per_block
    assert rb == R or rb % 8 == 0, "row block must be sublane aligned"
    grid = (pl.cdiv(R, rb),)

    return pl.pallas_call(
        _make_reg_kernel(R, rb),
        out_shape=jax.ShapeDtypeStruct((1, 2), jnp.float32),
        grid=grid,
        in_specs=[pl.BlockSpec((rb, D), lambda i: (i, 0))],
        out_specs=pl.BlockSpec(memory_space=pltpu.MemorySpace.SMEM),
        scratch_shapes=[pltpu.VMEM((2, D), jnp.float32)],
        compiler_params=pltpu.CompilerParams(
            # Sequential accumulation -- must NOT be flipped to "parallel".
            dimension_semantics=("arbitrary",)),
    )(emb_2d)


# ---------------------------------------------------------------------------
# Public wrapper: forward + get_L2_reg + get_L1_reg.
# ---------------------------------------------------------------------------
def env_aware_preference_learner(user_emb, item_emb, *, tm=512, tn=1024,
                                 compute_dtype=jnp.bfloat16,
                                 score_dtype=jnp.bfloat16,
                                 reg_rows_per_block=1024,
                                 vmem_limit_bytes=None):
    """Returns (scores[U, I], l2_reg scalar, l1_reg scalar)."""
    U, D = user_emb.shape
    I, D2 = item_emb.shape
    assert D == D2

    # bf16 MXU inputs (f32 accumulate); pre-transpose the item table in the
    # wrapper so the kernel does a plain (tm, D) @ (D, tn) with no XLU
    # transpose in front of the MXU.  Item index lands on the lane axis ->
    # lane-dense, unmasked score stores.
    u = user_emb.astype(compute_dtype)
    itT = item_emb.T.astype(compute_dtype)          # (D, I)

    # Clamp tiles to the problem.  Sub-full tiles must keep (8, 128)
    # alignment; full-dim tiles are legal regardless of divisibility.
    tm = U if tm >= U else tm
    tn = I if tn >= I else tn
    assert tm == U or tm % 8 == 0, "tm must be a multiple of 8 (or == U)"
    assert tn == I or tn % 128 == 0, "tn must be a multiple of 128 (or == I)"
    gm = pl.cdiv(U, tm)
    gn = pl.cdiv(I, tn)

    in_size = jnp.dtype(compute_dtype).itemsize
    out_size = jnp.dtype(score_dtype).itemsize

    # Stream the LARGER table exactly once: its block index varies only with
    # the OUTER grid axis (blocks whose index doesn't change between steps are
    # not re-fetched).  The smaller table rides the inner axis and is
    # re-streamed G_outer times -- the cheap direction.
    items_outer = (itT.size * in_size) >= (u.size * in_size)
    if items_outer:
        grid = (gn, gm)                                   # outer = items
        u_spec = pl.BlockSpec((tm, D), lambda j, i: (i, 0))
        it_spec = pl.BlockSpec((D, tn), lambda j, i: (0, j))
        out_spec = pl.BlockSpec((tm, tn), lambda j, i: (i, j))
        u_passes, it_passes = gn, 1
    else:
        grid = (gm, gn)                                   # outer = users
        u_spec = pl.BlockSpec((tm, D), lambda i, j: (i, 0))
        it_spec = pl.BlockSpec((D, tn), lambda i, j: (0, j))
        out_spec = pl.BlockSpec((tm, tn), lambda i, j: (i, j))
        u_passes, it_passes = 1, gm

    if vmem_limit_bytes is None:
        # Double-buffered u tile + itT tile + out tile, with 2x headroom;
        # capped at 48 MiB so it stays inside v7x's 64 MiB physical VMEM.
        tile_bytes = (2 * (tm * D + D * tn) * in_size
                      + 2 * tm * tn * out_size)
        vmem_limit_bytes = int(min(max(2 * tile_bytes, 32 * 1024 * 1024),
                                   48 * 1024 * 1024))

    cost = pl.CostEstimate(
        flops=2 * U * I * D,
        transcendentals=0,
        # Include the re-stream factor of the inner-axis table.
        bytes_accessed=in_size * (u_passes * U * D + it_passes * D * I)
        + out_size * U * I,
    )

    scores = pl.pallas_call(
        _scores_kernel,
        out_shape=jax.ShapeDtypeStruct((U, I), score_dtype),
        grid=grid,
        in_specs=[u_spec, it_spec],
        out_specs=out_spec,
        compiler_params=pltpu.CompilerParams(
            # No reduction axis (D untiled) -> both axes parallel; lets the
            # two v7x TensorCores split the score grid.
            dimension_semantics=("parallel", "parallel"),
            vmem_limit_bytes=vmem_limit_bytes,
        ),
        cost_estimate=cost,
    )(u, itT)

    # Regularization: one pass over each ORIGINAL f32 table in its natural
    # (rows, D) layout (row-tiled; never a full-item-width block).
    reg_u = _emb_reg(user_emb, rows_per_block=reg_rows_per_block)
    reg_i = _emb_reg(item_emb, rows_per_block=reg_rows_per_block)
    l2_reg = reg_u[0, 0] + reg_i[0, 0]
    l1_reg = reg_u[0, 1] + reg_i[0, 1]
    return scores, l2_reg, l1_reg


def predict(scores, user_id):
    # Glue: row-gather of the precomputed score matrix (stays in JAX).
    return scores[user_id]


if __name__ == "__main__":
    key = jax.random.PRNGKey(0)

    def make_tables(k, n_users, n_items, d):
        k_u, k_i = jax.random.split(k)
        scale = 1.0 / d ** 0.5
        ue = jax.random.normal(k_u, (n_users, d), jnp.float32) * scale
        ie = jax.random.normal(k_i, (n_items, d), jnp.float32) * scale
        return ue, ie

    def check(ue, ie, scores, l2, l1, atol, rtol):
        ref_scores = ue @ ie.T
        ref_l2 = jnp.sum(ue ** 2) + jnp.sum(ie ** 2)
        ref_l1 = jnp.sum(jnp.abs(ue)) + jnp.sum(jnp.abs(ie))
        assert scores.shape == ref_scores.shape
        assert jnp.allclose(scores.astype(jnp.float32), ref_scores,
                            atol=atol, rtol=rtol)
        assert jnp.allclose(l2, ref_l2, atol=1e-2, rtol=1e-3)
        assert jnp.allclose(l1, ref_l1, atol=1e-2, rtol=1e-3)

    # Case 1: item table larger -> items on the outer (one-pass) grid axis;
    # edge blocks on both output axes; default bf16 fast path.
    ue, ie = make_tables(jax.random.fold_in(key, 1), 200, 700, 40)
    s, l2, l1 = env_aware_preference_learner(ue, ie, tm=64, tn=256)
    jax.block_until_ready((s, l2, l1))
    check(ue, ie, s, l2, l1, atol=2e-2, rtol=2e-2)

    # Case 2: user table larger -> users on the outer axis; f32 end-to-end and
    # small reg row blocks for a tight numerical check of tiling + masking.
    ue, ie = make_tables(jax.random.fold_in(key, 2), 700, 200, 40)
    s, l2, l1 = env_aware_preference_learner(
        ue, ie, tm=64, tn=128,
        compute_dtype=jnp.float32, score_dtype=jnp.float32,
        reg_rows_per_block=64)
    jax.block_until_ready((s, l2, l1))
    check(ue, ie, s, l2, l1, atol=1e-4, rtol=1e-4)

    # Case 3: tiny tables with the default (large) tiles -> full-dim blocks,
    # single-step grid.
    ue, ie = make_tables(jax.random.fold_in(key, 3), 20, 300, 40)
    s, l2, l1 = env_aware_preference_learner(ue, ie)
    jax.block_until_ready((s, l2, l1))
    check(ue, ie, s, l2, l1, atol=2e-2, rtol=2e-2)

    # Exercise predict() for a couple of users.
    _ = jax.block_until_ready(predict(s, jnp.array([0, 3])))

    print("KERNEL_OK")
</pallas_src>

<mosaic_0001>
module attributes {stable_mosaic.version = 11 : i64} {
  func.func @_scores_kernel(%arg0: i32, %arg1: i32, %arg2: memref<64x40xbf16, #tpu.memory_space<vmem>>, %arg3: memref<40x256xbf16, #tpu.memory_space<vmem>>, %arg4: memref<64x256xbf16, #tpu.memory_space<vmem>>) attributes {dimension_semantics = [#tpu.dimension_semantics<parallel>, #tpu.dimension_semantics<parallel>], iteration_bounds = array<i64: 3, 4>, scalar_prefetch = 0 : i64, scratch_operands = 0 : i64, tpu.core_type = #tpu.core_type<tc>, window_params = [{transform_indices = @transform_0, window_bounds = array<i64: 64, 40>}, {transform_indices = @transform_1, window_bounds = array<i64: 40, 256>}, {transform_indices = @transform_2, window_bounds = array<i64: 64, 256>}]} {
    %c0 = arith.constant 0 : index
    %c0_0 = arith.constant 0 : index
    %0 = vector.load %arg2[%c0, %c0_0] : memref<64x40xbf16, #tpu.memory_space<vmem>>, vector<64x40xbf16>
    %c0_1 = arith.constant 0 : index
    %c0_2 = arith.constant 0 : index
    %1 = vector.load %arg3[%c0_1, %c0_2] : memref<40x256xbf16, #tpu.memory_space<vmem>>, vector<40x256xbf16>
    %cst = arith.constant dense<0.000000e+00> : vector<64x256xf32>
    %2 = tpu.matmul %0, %1, %cst {dimension_numbers = #tpu.dot_dimension_numbers<[1], [0], [0], [1], [0, 0, 1, 1], [], []>} : vector<64x40xbf16>, vector<40x256xbf16>, vector<64x256xf32> -> vector<64x256xf32>
    %3 = arith.truncf %2 : vector<64x256xf32> to vector<64x256xbf16>
    %c0_3 = arith.constant 0 : index
    %c0_4 = arith.constant 0 : index
    %4 = vector.load %arg4[%c0_3, %c0_4] : memref<64x256xbf16, #tpu.memory_space<vmem>>, vector<64x256xbf16>
    tpu.vector_store %arg4[%c0_3, %c0_4], %3 {strides = array<i32>} : memref<64x256xbf16, #tpu.memory_space<vmem>>, vector<64x256xbf16>,
    return
  }
  func.func @transform_0(%arg0: i32, %arg1: i32) -> (i32, i32) {
    %c0_i32 = arith.constant 0 : i32
    %c0_i32_0 = arith.constant 0 : i32
    return %arg1, %c0_i32 : i32, i32
  }
  func.func @transform_1(%arg0: i32, %arg1: i32) -> (i32, i32) {
    %c0_i32 = arith.constant 0 : i32
    %c0_i32_0 = arith.constant 0 : i32
    return %c0_i32, %arg0 : i32, i32
  }
  func.func @transform_2(%arg0: i32, %arg1: i32) -> (i32, i32) {
    %c0_i32 = arith.constant 0 : i32
    return %arg1, %arg0 : i32, i32
  }
}

</mosaic_0001>

<bundles_post_ra>
// kernel: tpu_custom_call.1
= control target key start
LH: loop header
LB: loop body
LE: loop exit
PB: predicated region body
PF: predicated region fallthrough
CT: control target
= control target key end

     0   :  { %7 = vsyncpa [#allocation4], 0  ;;  %s1084_s0 = inlined_call_operand.vmem [shape: bf16[200,40], index: 0, kind: input, shape index: {}]   ;;  %s1085_s1 = inlined_call_operand.vmem [shape: bf16[40,700], index: 1, kind: input, shape index: {}]   ;;  %s1086_s2 = inlined_call_operand.hbm [shape: bf16[200,700], index: 2, kind: output, shape index: {}]  }
   0x1   :  { %9 = vsyncpa [#allocation4 + $0x1], 0  ;;  %s881_s9 = smov 0   ;;  %s883_s10 = smov 0  }
   0x2   :  { %s885_s11 = smov 0   ;;  %s887_s12 = smov 0  }
   0x3   :  { %s889_s13 = smov 0   ;;  %s891_s14 = smov 0  }
   0x4   :  { %s893_s15 = smov 0   ;;  %s895_s16 = smov 0  }
   0x5   :  { %s897_s17 = smov 0   ;;  %s899_s18 = smov 0  }
   0x6 LB: > { %s583_s19 = sadd.s32 4294967295, %s859_s18   ;;  %s584_s20 = sadd.s32 4294967294, %s859_s18   ;;  %s859_s18 = sphi %s899_s18, %s15_s18   ;;  %s855_s17 = sphi %s897_s17, %s1098_s17   ;;  %s851_s16 = sphi %s895_s16, %s1097_s16   ;;  %s847_s15 = sphi %s893_s15, %s1096_s15   ;;  %s843_s14 = sphi %s891_s14, %s1095_s14   ;;  %s839_s13 = sphi %s889_s13, %s1094_s13   ;;  %s835_s12 = sphi %s887_s12, %s1093_s12   ;;  %s831_s11 = sphi %s885_s11, %s1092_s11   ;;  %s827_s10 = sphi %s883_s10, %s1091_s10   ;;  %s823_s9 = sphi %s881_s9, %s1090_s9  }
   0x7   : > { %s24_s21 = sadd.s32 1, %s851_s16  ;;  %s27_s22 = sadd.s32 1, %s855_s17 }
   0x8   : > { %p25_p0 = scmp.ge.s32.totalorder %s24_s21, 4  ;;  %s60_s23 = sadd.s32 1, %s839_s13 }
   0x9   : > { %p67_p1 = scmp.ne.s32.totalorder %s839_s13, %s835_s12  ;;  %p68_p2 = scmp.eq.s32.totalorder %s859_s18, 0 }
   0xa   : > { %s1100_s21 = smov (%p25_p0, %s24_s21), 0  ;;  %s1102_s22 = smov (!%p25_p0, %s27_s22), %s855_s17 }
   0xb   : > { %p942_p3 = por %p68_p2, %p67_p1  ;;  %s83_s25 = ssub.s32 %s851_s16, %s1100_s21 }
   0xc   : > { %p29_p4 = scmp.ge.s32.totalorder %s1102_s22, 3  ;;  %s88_s26 = sadd.s32 1, %s831_s11 }
   0xd   : > { %p98_p5 = scmp.ne.s32.totalorder %s831_s11, %s827_s10  ;;  %p99_p6 = scmp.eq.s32.totalorder %s583_s19, 11 }
   0xe   : > { %s1104_s22 = smov (%p29_p4, %s1102_s22), 0  ;;  %p104_p8 = scmp.ne.s32.totalorder %s827_s10, %s823_s9 }
   0xf   : > { %p953_p7 = por %p99_p6, %p98_p5  ;;  %s57_s28 = ssub.s32 %s855_s17, %s1104_s22 }
  0x10   : > { %p105_p9 = scmp.eq.s32.totalorder %s584_s20, 11  ;;  %p58_p10 = scmp.eq.s32.totalorder %s57_s28, 0 }
  0x11   : > { %s85_s29 = sor.u32 %s83_s25, %s57_s28  ;;  %p586_p13 = scmp.ge.s32.totalorder %s859_s18, 12 }
  0x12   : > { %p86_p11 = scmp.eq.s32.totalorder %s85_s29, 0  ;;  %p961_p12 = por %p105_p9, %p104_p8 }
  0x13   : > { %s966_s3 = scalar_select %p58_p10, %s839_s13, %s60_s23  }
  0x14   : > { %s969_s4 = scalar_select %p86_p11, %s831_s11, %s88_s26  }
  0x15   : > { %121 = sbr.rel (%p586_p13) target bundleno = 35 (0x23), region = 16 }
  0x1c   : > { %141 = sbr.rel (!%p942_p3) target bundleno = 35 (0x23), region = 24  ;;  %s143_s5 = sand.u32 (%p942_p3), 1, %s839_s13  }
  0x1d   : > { %s628_s6 = sshll.u32 (%p942_p3), %s855_s17, 3  ;;  %s644_s7 = smul.u32 (%p942_p3), 40, %s143_s5 }
  0x1e   : > { %s148_s20 = scalar_lea.vmem (%p942_p3), %s1085_s1, %s628_s6 }
  0x1f   : > { %v184_v0 = vld [vmem:[%s148_s20] sm:$0xff] (%p942_p3)  ;;  %v186_v1 = vld [vmem:[%s148_s20 + $0x18] sm:$0xff] (%p942_p3)  ;;  %v188_v2 = vld [vmem:[%s148_s20 + $0x30] sm:$0xff] (%p942_p3)  ;;  %s145_s23 = scalar_lea.vmem (%p942_p3), [#allocation2], %s644_s7 }
  0x20   : > { %v190_v3 = vld [vmem:[%s148_s20 + $0x48] sm:$0xff] (%p942_p3)  ;;  %v192_v4 = vld [vmem:[%s148_s20 + $0x60] sm:$0xff] (%p942_p3)  ;;  %185 = vst [vmem:[%s145_s23] sm:$0xff] (%p942_p3), %v184_v0  ;;  %187 = vst [vmem:[%s145_s23 + $0x8] sm:$0xff] (%p942_p3), %v186_v1 }
  0x21   : > { %189 = vst [vmem:[%s145_s23 + $0x10] sm:$0xff] (%p942_p3), %v188_v2  ;;  %191 = vst [vmem:[%s145_s23 + $0x18] sm:$0xff] (%p942_p3), %v190_v3 }
  0x22   : > { %193 = vst [vmem:[%s145_s23 + $0x20] sm:$0xff] (%p942_p3), %v192_v4 }
  0x23 PF: > { %p589_p0 = scmp.ge.s32.totalorder %s859_s18, 1  ;;  %p198_p1 = scmp.lt.s32.totalorder %s859_s18, 13 }
  0x25   : > { %p199_p2 = pnand %p589_p0, %p198_p1 }
  0x26   : > { %s205_s24 = sand.u32 (!%p199_p2), 1, %s835_s12   ;;  %s983_s25 = sshll.u32 (!%p199_p2), %s843_s14, 3  ;;  %v861_v5 = vmov (!%p199_p2), 0   ;;  %vm329_vm0 = vcmask (!%p199_p2), 1043456   ;;  %vm316_vm1 = vcmask (!%p199_p2), 326656  }
  0x27   : > { %202 = sbr.rel (%p199_p2) target bundleno = 312 (0x138), region = 62  ;;  %368 = vmatprep.mubr.bf16.mxu0 (!%p199_p2), %v861_v5  ;;  %388 = vmatprep.mubr.bf16.mxu1 (!%p199_p2), %v861_v5  ;;  %p240_p3 = scmp.lt.s32.totalorder (!%p199_p2), %s983_s25, 24 }
  0x28   : > { %s645_s26 = smul.u32 (!%p199_p2), 40, %s205_s24  ;;  %s232_s8 = sand.u32 (!%p199_p2), 1, %s827_s10  }
  0x29   : > { %s590_s19 = sshll.u32 (!%p199_p2), %s232_s8, 6  ;;  %s1005_s23 = scalar_lea.sflag (!%p199_p2), [#allocation4], %s232_s8 }
  0x2a   : > { %s207_s28 = scalar_lea.vmem (!%p199_p2), [#allocation2], %s645_s26  ;;  %s993_s20 = scalar_lea.vmem (!%p199_p2), [#allocation3], %s590_s19 }
  0x2b   : > { %v737_v6 = vld [vmem:[%s207_s28 + $0x4] ss:$8 sps:$4 sm:$0xff] (!%p199_p2)   ;;  %v739_v7 = vld [vmem:[%s207_s28] ss:$8 sps:$4 sm:$0xff] (!%p199_p2)   ;;  %v740_v8 = vld [vmem:[%s207_s28 + $0x14] ss:$8 sps:$4 sm:$0xff] (!%p199_p2)  }
  0x2c   : > { %336 = vmatprep.subr.bf16.mxu0 (!%p199_p2), %v737_v6  ;;  %638 = vmatprep.subr.bf16.mxu1 (!%p199_p2), %v737_v6  ;;  %v270_v9 = vld [vmem:[%s207_s28 + $0x20] sm:$0xff] (!%p199_p2)  ;;  %v742_v10 = vld [vmem:[%s207_s28 + $0x10] ss:$8 sps:$4 sm:$0xff] (!%p199_p2)  }
  0x2d   : > { %337 = vmatpush1.bf16.msra.mxu0 (!%p199_p2), %v739_v7  ;;  %641 = vmatpush1.bf16.msra.mxu1 (!%p199_p2), %v739_v7  ;;  %v602_v11 = vcombine.high (!%p199_p2), %v270_v9, %v270_v9  ;;  %v601_v12 = vcombine.low (!%p199_p2), %v270_v9, %v270_v9 }
  0x2e   : > { %s241_s29 = scalar_select %p240_p3, %s983_s25, 24  ;;  %338 = vmatprep.subr.bf16.mxu0 %v740_v8  ;;  %639 = vmatprep.subr.bf16.mxu1 %v740_v8 }
  0x2f   : > { %v331_v13 = vsel %vm329_vm0, %v601_v12, 0  ;;  %s618_s24 = sshll.u32 (%p953_p7), %s847_s15, 1  ;;  %s475_s26 = ssub.s32 (%p953_p7), 25, %s983_s25 }
  0x30   : > { %s592_s5 = sshll.u32 %s241_s29, 2  ;;  %p476_p4 = scmp.lt.s32.totalorder (%p953_p7), %s475_s26, 8 }
  0x31   : > { %s243_s7 = scalar_lea.vmem %s1084_s0, %s592_s5  ;;  %339 = vmatpush1.bf16.msra.mxu0 %v742_v10  ;;  %642 = vmatpush1.bf16.msra.mxu1 %v742_v10 }
  0x32   : > { %603 = vmatprep.subr.msk.bf16.mxu0 %vm329_vm0, %v602_v11  ;;  %640 = vmatprep.subr.msk.bf16.mxu1 %vm329_vm0, %v602_v11  ;;  %v745_v14 = vld [vmem:[%s243_s7] sm:$0xff]   ;;  %v746_v15 = vld [vmem:[%s243_s7 + $0x10] sm:$0xff]   ;;  %v747_v16 = vld [vmem:[%s243_s7 + $0x8] sm:$0xff]  }
  0x33   : > { %v748_v17 = vld [vmem:[%s243_s7 + $0x18] sm:$0xff]  }
  0x35   : > { %341 = vmatpush1.bf16.msra.mxu0 %v331_v13  ;;  %643 = vmatpush1.bf16.msra.mxu1 %v331_v13 }
  0x38   : > { %604 = vmatmul.mubr.msk.bf16.vlgmr.msra.gmra.mrb[0].mxu0 %vm316_vm1, %v745_v14  ;;  %606 = vmatmul.mubr.msk.bf16.vlgmr.msra.gmra.mrb[0].mxu1 %vm316_vm1, %v746_v15 }
  0x39   : > { %378 = vmatprep.mubr.bf16.mxu0 %v861_v5  ;;  %398 = vmatprep.mubr.bf16.mxu1 %v861_v5 }
  0x40   : > { %605 = vmatmul.mubr.msk.bf16.gmra.mrb[4].mxu0 %vm316_vm1, %v747_v16  ;;  %607 = vmatmul.mubr.msk.bf16.gmra.mrb[4].mxu1 %vm316_vm1, %v748_v17 }
 0x10b   : > { %v370_v18 = vpop.f32.mrb[0].mxu0  ;;  %v390_v19 = vpop.f32.mrb[0].mxu1 }
 0x10c   : > { %v372_v20 = vpop.f32.mrb[1].mxu0  ;;  %v392_v21 = vpop.f32.mrb[1].mxu1 }
 0x10d   : > { %v629_v22 = vpack.c.bf16 %v372_v20, %v370_v18  ;;  %v633_v23 = vpack.c.bf16 %v392_v21, %v390_v19  ;;  %v374_v24 = vpop.f32.mrb[2].mxu0  ;;  %v394_v25 = vpop.f32.mrb[2].mxu1 }
 0x10e   : > { %v376_v26 = vpop.f32.mrb[3].mxu0  ;;  %v396_v27 = vpop.f32.mrb[3].mxu1 }
 0x10f   : > { %457 = vst [vmem:[%s993_s20] sm:$0xff] %v629_v22  ;;  %461 = vst [vmem:[%s993_s20 + $0x20] sm:$0xff] %v633_v23  ;;  %v630_v28 = vpack.c.bf16 %v376_v26, %v374_v24  ;;  %v634_v29 = vpack.c.bf16 %v396_v27, %v394_v25 }
 0x111   : > { %458 = vst [vmem:[%s993_s20 + $0x8] sm:$0xff] %v630_v28  ;;  %462 = vst [vmem:[%s993_s20 + $0x28] sm:$0xff] %v634_v29 }
 0x113   : > { %v380_v30 = vpop.f32.mrb[4].mxu0  ;;  %v400_v31 = vpop.f32.mrb[4].mxu1  ;;  %472 = sbr.rel (!%p953_p7) target bundleno = 312 (0x138), region = 70 }
 0x114   : > { %v382_v32 = vpop.f32.mrb[5].mxu0  ;;  %v402_v33 = vpop.f32.mrb[5].mxu1 }
 0x115   : > { %v631_v34 = vpack.c.bf16 %v382_v32, %v380_v30  ;;  %v635_v35 = vpack.c.bf16 %v402_v33, %v400_v31  ;;  %v384_v36 = vpop.f32.mrb[6].mxu0  ;;  %v404_v37 = vpop.f32.mrb[6].mxu1 }
 0x116   : > { %v386_v38 = vpop.f32.mrb[7].mxu0  ;;  %v406_v39 = vpop.f32.mrb[7].mxu1 }
 0x117   : > { %459 = vst [vmem:[%s993_s20 + $0x10] sm:$0xff] %v631_v34  ;;  %463 = vst [vmem:[%s993_s20 + $0x30] sm:$0xff] %v635_v35  ;;  %v632_v40 = vpack.c.bf16 %v386_v38, %v384_v36  ;;  %v636_v41 = vpack.c.bf16 %v406_v39, %v404_v37 }
 0x119   : > { %460 = vst [vmem:[%s993_s20 + $0x18] sm:$0xff] %v632_v40  ;;  %464 = vst [vmem:[%s993_s20 + $0x38] sm:$0xff] %v636_v41 }
 0x11a   : > { %s1106_s26 = smov (!%p476_p4, %s475_s26), 8 }
 0x11b   : > { %s1011_s28 = sshll.u32 %s1106_s26, 7 }
 0x11c   : > { %s481_s29 = ssub.s32 1024, %s1011_s28 }
 0x11d   : > { %482 = vsyncadd %s1005_s23, %s481_s29  ;;  %p621_p5 = scmp.ne.s32.totalorder %s1011_s28, 0  ;;  %s646_s27 = smul.u32 48, %s843_s14 }
 0x11e   : > { %s489_s5 = sshll.u32 %s993_s20, 4  ;;  %s862_s19 = smov [#allocation3]   ;;  %s1018_s5 = int_to_ptr.vmem [resolvable:$true] %s489_s5 }
 0x11f   : > { %s485_s12 = sadd.s32 %s646_s27, %s618_s24  ;;  %s749_s8 = scalar_lea.vmem %s1018_s5, %s1011_s28 }
 0x120   : > { %s623_s15 = sshll.u32 %s485_s12, 6  ;;  %p750_p6 = scmp.ne.s32.totalorder %s1018_s5, %s749_s8 }
 0x121   : > { %s1023_s7 = scalar_lea.hbm %s1086_s2, %s623_s15  ;;  %s753_s14 = sshll.u32 %s862_s19, 4  ;;  %s754_s14 = int_to_ptr.vmem [resolvable:$false] %s753_s14 }
 0x122   : > { %p751_p7 = pnand %p750_p6, %p621_p5  ;;  %s755_s20 = scalar_lea.vmem %s754_s14, 2048 }
 0x123   : > { %p756_p9 = scmp.lt.s32.totalorder %s1018_s5, %s754_s14  ;;  %p757_p10 = scmp.lt.s32.totalorder %s755_s20, %s749_s8 }
 0x124   : > { %p752_p8 = pneg %p751_p7 }
 0x125   : > { %p758_p11 = por %p757_p10, %p756_p9 }
 0x127   : > { %p759_p13 = pnand %p758_p11, %p752_p8 }
 0x129   : > { %762 = shalt.err (!%p759_p13)
}
 0x12a   : > { %s763_s24 = scalar_lea.hbm %s1023_s7, %s1011_s28  ;;  %s767_s27 = scalar_lea.hbm %s1086_s2, 9600 }
 0x12b   : > { %p764_p0 = scmp.ne.s32.totalorder %s1023_s7, %s763_s24  ;;  %p768_p3 = scmp.lt.u32.totalorder %s1023_s7, %s1086_s2 }
 0x12c   : > { %p769_p4 = scmp.lt.u32.totalorder %s767_s27, %s763_s24  ;;  %p771_p7 = scmp.lt.u32.totalorder %s763_s24, %s1023_s7 }
 0x12d   : > { %p765_p1 = pnand %p764_p0, %p621_p5 }
 0x12e   : > { %p770_p6 = por %p769_p4, %p768_p3 }
 0x12f   : > { %p766_p2 = pneg %p765_p1 }
 0x130   : > { %p772_p8 = por %p771_p7, %p770_p6 }
 0x132   : > { %p773_p9 = pnand %p772_p8, %p766_p2 }
 0x134   : > { %776 = shalt.err (!%p773_p9)
}
 0x135   : > { %s863_s25 = smov 128   ;;  %s864_s6 = smov 384  }
 0x136   : > { %s865_s8 = smov 8  }
 0x137   : > { %495 = dma.vmem_to_hbm [thread:$0]  (%p621_p5), %s1018_s5, %s1011_s28, %s1023_s7, %s1005_s23, %s863_s25, %s864_s6, %s865_s8  }
 0x138 PF: > { %p652_p10 = scmp.ge.s32.totalorder %s859_s18, 2  ;;  %s504_s19 = sand.u32 1, %s823_s9  }
 0x139   : > { %s505_s14 = scalar_lea.sflag [#allocation4], %s504_s19 }
 0x13a   : > { %p649_p11 = pnand %p652_p10, %p961_p12 }
 0x13c   : > { %818 = dma.done.wait (!%p649_p11), %s505_s14, 1024  }
 0x13d   : > { %820 = vsyncadd (!%p649_p11), %s505_s14, 4294966272  ;;  %s15_s18 = sadd.s32 1, %s859_s18   ;;  %s1090_s9 = smov %s827_s10 }
 0x13e   : > { %p12_p13 = scmp.ge.s32.totalorder %s15_s18, 14   ;;  %s1091_s10 = smov %s831_s11 }
 0x13f   : > { %s1092_s11 = smov %s969_s4  ;;  %s1093_s12 = smov %s839_s13 }
 0x140   : > { %s1094_s13 = smov %s966_s3  ;;  %s1095_s14 = smov %s851_s16 }
 0x141   : > { %s1096_s15 = smov %s855_s17  ;;  %s1097_s16 = smov %s1100_s21 }
 0x142   : > { %s1098_s17 = smov %s1104_s22  ;;  %14 = sbr.rel (!%p12_p13) target bundleno = 6 (0x6), region = 109 }
 0x149   :  { %510 = vsyncpa [#allocation4], 1 }
 0x14a   :  { %512 = vsyncpa [#allocation4 + $0x1], 1 }

</bundles_post_ra>
